<compile_context>
chip_gen: v6e
topology: v6e:2x2x1
jax: 0.10.0
libtpu: 0.0.40
codegen_flags: <defaults>
</compile_context>

<pallas_src>
import jax
import jax.numpy as jnp
from jax.experimental import pallas as pl
from jax.experimental.pallas import tpu as pltpu


def _round_up(n: int, m: int) -> int:
    return ((n + m - 1) // m) * m


def _align_feature(n: int) -> int:
    # v6e/v7x MXUs are 2x256x256: use 256-aligned feature dims when the native dim is
    # already >= 256 (full systolic-array occupancy); otherwise the 128-lane minimum.
    return _round_up(n, 256) if n >= 256 else _round_up(n, 128)


def _pad2d(a, rows: int, cols: int):
    pr, pc = rows - a.shape[0], cols - a.shape[1]
    if pr == 0 and pc == 0:
        return a  # already aligned (e.g. caller stored pre-padded weights): no extra HBM pass
    return jnp.pad(a, ((0, pr), (0, pc)))


def mlp_kernel(x_ref, w0_ref, b0_ref, w1_ref, b1_ref, out_ref, acc_ref):
    """One (batch-tile, hidden-tile) step of Linear -> Tanh -> [Dropout=id] -> Linear."""
    h_idx = pl.program_id(1)

    @pl.when(h_idx == 0)
    def _():
        acc_ref[...] = jnp.zeros_like(acc_ref)

    # Hidden slice: MXU matmul with f32 accumulation; bias add + tanh kept in f32
    # (v5e has no bf16 VPU/EUP).
    h = jnp.dot(x_ref[...], w0_ref[...], preferred_element_type=jnp.float32)
    h = jnp.tanh(h + b0_ref[...])                       # (TB, TH) + (1, TH) broadcast
    # Dropout (inference mode / model.eval()) is identity.
    acc_ref[...] += jnp.dot(h.astype(w1_ref.dtype), w1_ref[...],
                            preferred_element_type=jnp.float32)

    @pl.when(h_idx == pl.num_programs(1) - 1)
    def _():
        # Lane-dense (TB, Cp) store, directly in the final dtype.
        out_ref[...] = (acc_ref[...] + b1_ref[...]).astype(out_ref.dtype)


def mlp_classifier_forward(x, w0, b0, w1, b1, *, block_b: int = 256,
                           hidden_block: int | None = None,
                           mxu_dtype=jnp.bfloat16):
    """x: (B, 1, input_size) -> logits (B, num_classes).

    w0: (input_size, hidden), b0: (hidden,), w1: (hidden, num_classes), b1: (num_classes,)
    (weights stored transposed vs PyTorch so the kernel does plain x @ W + b).

    mxu_dtype: dtype for x/w0/w1 on the MXU (f32 accumulation, f32 bias/tanh either way).
      Default bf16 (native MXU rate on all three chips); pass None for a fully-f32 path.
    hidden_block: optional override of the hidden-dim tile (multiple of 128); by default
      the hidden dim is kept fully VMEM-resident unless the footprint would exceed ~70%
      of v7x's 64 MiB per-TC VMEM, in which case it is tiled automatically.
    For best steady-state perf, store w0/b0/w1/b1 pre-padded (128/256-aligned) and
    pre-cast to mxu_dtype so the wrapper's pads/casts are no-ops.
    """
    B = x.shape[0]
    D = x.shape[-1]
    H = w0.shape[1]
    C = w1.shape[1]
    out_dtype = x.dtype
    x2d = x.reshape(B, D)                               # squeeze(1)

    # --- aligned feature dims ---------------------------------------------------
    Dp = _align_feature(D)
    Hp = _align_feature(H)
    Cp = _align_feature(C)

    # --- batch tiling: bound padding waste --------------------------------------
    if B <= block_b:
        TB = _round_up(B, 8)                            # single tile, <=7 wasted rows
        Bp = TB
    else:
        Bp = _round_up(B, 128)                          # <=127 wasted rows
        TB = 128
        for cand in (512, 256, 128):
            if cand <= block_b and Bp % cand == 0:
                TB = cand
                break

    # --- padding / casts (skipped when already aligned) -------------------------
    # NOTE: padded *batch* rows are garbage (they compute tanh(b0) != 0) but are sliced
    # off below; padded feature/hidden/class columns are exact zeros through both layers.
    xp = _pad2d(x2d, Bp, Dp)
    w0p = _pad2d(w0, Dp, Hp)
    w1p = _pad2d(w1, Hp, Cp)
    b0p = _pad2d(b0.reshape(1, H), 1, Hp).astype(jnp.float32)
    b1p = _pad2d(b1.reshape(1, C), 1, Cp).astype(jnp.float32)
    if mxu_dtype is not None:
        xp = xp.astype(mxu_dtype)
        w0p = w0p.astype(mxu_dtype)
        w1p = w1p.astype(mxu_dtype)

    x_item = xp.dtype.itemsize
    w_item = w0p.dtype.itemsize
    o_item = jnp.dtype(out_dtype).itemsize

    # --- hidden-dim tiling (escape hatch for large H) ---------------------------
    def _vmem_need(th: int, nh: int) -> int:
        wbuf = 1 if nh == 1 else 2                      # resident vs pipelined weights
        return (2 * TB * Dp * x_item                    # x tile, double-buffered
                + 2 * TB * Cp * o_item                  # out tile, double-buffered
                + wbuf * (Dp * th * w_item + th * 4 + th * Cp * w_item)  # w0/b0/w1
                + Cp * 4                                # b1 (single-buffered)
                + TB * Cp * 4                           # f32 accumulator scratch
                + TB * th * 4)                          # in-kernel f32 hidden temporary

    if hidden_block is not None:
        TH = min(_round_up(hidden_block, 128), Hp)
        while Hp % TH != 0:                             # snap to a divisor of Hp
            TH += 128
    else:
        budget = int(0.70 * (64 << 20))                 # v7x: 64 MiB VMEM per TensorCore
        TH = 128
        for t in range(Hp, 127, -128):
            if Hp % t == 0 and _vmem_need(t, 1 if t == Hp else 2) <= budget:
                TH = t
                break
    nh = Hp // TH

    vmem_limit = int(_vmem_need(TH, nh) * 1.25) + (1 << 20)
    vmem_limit = max(8 << 20, min(vmem_limit, 64 << 20))

    # --- specs -------------------------------------------------------------------
    def _spec(shape, idx, mode=None):
        if mode is None:
            return pl.BlockSpec(shape, idx)
        return pl.BlockSpec(shape, idx, pipeline_mode=mode)

    resident = pl.Buffered(1)                           # constant index_map: nothing to pipeline
    w_mode = resident if nh == 1 else None              # double-buffer weights only if h-tiled

    grid = (Bp // TB, nh)

    cost = pl.CostEstimate(
        flops=2 * Bp * (Dp * Hp + Hp * Cp),
        transcendentals=Bp * Hp,
        bytes_accessed=int(xp.size * x_item + (w0p.size + w1p.size) * w_item
                           + (b0p.size + b1p.size) * 4 + Bp * Cp * o_item),
    )

    out = pl.pallas_call(
        mlp_kernel,
        out_shape=jax.ShapeDtypeStruct((Bp, Cp), out_dtype),
        grid_spec=pltpu.PrefetchScalarGridSpec(
            num_scalar_prefetch=0,
            grid=grid,
            in_specs=[
                _spec((TB, Dp), lambda i, h: (i, 0)),              # x tile (pipelined over batch)
                _spec((Dp, TH), lambda i, h: (0, h), w_mode),      # w0
                _spec((1, TH), lambda i, h: (0, h), w_mode),       # b0
                _spec((TH, Cp), lambda i, h: (h, 0), w_mode),      # w1
                _spec((1, Cp), lambda i, h: (0, 0), resident),     # b1 (always resident)
            ],
            out_specs=pl.BlockSpec((TB, Cp), lambda i, h: (i, 0)),
            scratch_shapes=[pltpu.VMEM((TB, Cp), jnp.float32)],    # f32 logits accumulator
        ),
        compiler_params=pltpu.CompilerParams(
            dimension_semantics=("parallel", "arbitrary"),         # batch sharded on v7x megacore
            vmem_limit_bytes=vmem_limit,
        ),
        cost_estimate=cost,
    )(xp, w0p, b0p, w1p, b1p)

    return out[:B, :C]


if __name__ == "__main__":
    # Small shapes consistent with the module's forward: (batch, 1, input_size)
    batch = 8
    input_size = 32
    hidden_size = 64
    num_classes = 16

    key = jax.random.PRNGKey(0)
    kx, kw0, kb0, kw1, kb1 = jax.random.split(key, 5)

    x = jax.random.normal(kx, (batch, 1, input_size), dtype=jnp.float32)
    # Deterministic parameter init (PyTorch-style uniform bounds, synthetic values).
    lim0 = 1.0 / jnp.sqrt(input_size)
    lim1 = 1.0 / jnp.sqrt(hidden_size)
    w0 = jax.random.uniform(kw0, (input_size, hidden_size), jnp.float32, -lim0, lim0)
    b0 = jax.random.uniform(kb0, (hidden_size,), jnp.float32, -lim0, lim0)
    w1 = jax.random.uniform(kw1, (hidden_size, num_classes), jnp.float32, -lim1, lim1)
    b1 = jax.random.uniform(kb1, (num_classes,), jnp.float32, -lim1, lim1)

    # Reference in plain JAX (same math; dropout is identity in eval mode).
    x2d = x.reshape(batch, input_size)
    ref = jnp.tanh(x2d @ w0 + b0) @ w1 + b1

    # f32 datapath: exact match expected.
    out_f32 = mlp_classifier_forward(x, w0, b0, w1, b1, mxu_dtype=None)
    out_f32 = jax.block_until_ready(out_f32)
    assert out_f32.shape == (batch, num_classes)
    assert jnp.allclose(out_f32, ref, atol=1e-5, rtol=1e-5)

    # Default bf16-MXU datapath (f32 accumulation / bias / tanh): looser tolerance.
    out_bf16 = mlp_classifier_forward(x, w0, b0, w1, b1)
    out_bf16 = jax.block_until_ready(out_bf16)
    assert out_bf16.shape == (batch, num_classes)
    assert jnp.allclose(out_bf16, ref, atol=3e-2, rtol=3e-2)

    # Hidden-tiled (accumulator) path: hidden padded to 256, tiled at 128 -> 2 h-steps,
    # exercising the pl.when init/finalize + f32 scratch accumulation escape hatch.
    hidden2 = 256
    kw0b, kb0b, kw1b = jax.random.split(kb1, 3)
    lim1b = 1.0 / jnp.sqrt(hidden2)
    w0b = jax.random.uniform(kw0b, (input_size, hidden2), jnp.float32, -lim0, lim0)
    b0b = jax.random.uniform(kb0b, (hidden2,), jnp.float32, -lim0, lim0)
    w1b = jax.random.uniform(kw1b, (hidden2, num_classes), jnp.float32, -lim1b, lim1b)
    ref2 = jnp.tanh(x2d @ w0b + b0b) @ w1b + b1
    out_tiled = mlp_classifier_forward(x, w0b, b0b, w1b, b1,
                                       hidden_block=128, mxu_dtype=None)
    out_tiled = jax.block_until_ready(out_tiled)
    assert out_tiled.shape == (batch, num_classes)
    assert jnp.allclose(out_tiled, ref2, atol=1e-5, rtol=1e-5)

    print("KERNEL_OK")
</pallas_src>

<mosaic_0001>
module attributes {stable_mosaic.version = 11 : i64} {
  func.func @mlp_kernel(%arg0: i32, %arg1: i32, %arg2: memref<8x128xf32, #tpu.memory_space<vmem>>, %arg3: memref<128x128xf32, #tpu.memory_space<vmem>>, %arg4: memref<1x128xf32, #tpu.memory_space<vmem>>, %arg5: memref<128x128xf32, #tpu.memory_space<vmem>>, %arg6: memref<1x128xf32, #tpu.memory_space<vmem>>, %arg7: memref<8x128xf32, #tpu.memory_space<vmem>>, %arg8: memref<8x128xf32, #tpu.memory_space<vmem>>) attributes {dimension_semantics = [#tpu.dimension_semantics<parallel>, #tpu.dimension_semantics<arbitrary>], iteration_bounds = array<i64: 1, 1>, scalar_prefetch = 0 : i64, scratch_operands = 1 : i64, tpu.core_type = #tpu.core_type<tc>, window_params = [{transform_indices = @transform_0, window_bounds = array<i64: 8, 128>}, {pipeline_mode = #tpu.pipeline_mode<synchronous>, transform_indices = @transform_1, window_bounds = array<i64: 128, 128>}, {pipeline_mode = #tpu.pipeline_mode<synchronous>, transform_indices = @transform_2, window_bounds = array<i64: 1, 128>}, {pipeline_mode = #tpu.pipeline_mode<synchronous>, transform_indices = @transform_3, window_bounds = array<i64: 128, 128>}, {pipeline_mode = #tpu.pipeline_mode<synchronous>, transform_indices = @transform_4, window_bounds = array<i64: 1, 128>}, {transform_indices = @transform_5, window_bounds = array<i64: 8, 128>}]} {
    %c0_i32 = arith.constant 0 : i32
    %0 = arith.cmpi eq, %arg1, %c0_i32 : i32
    %1 = arith.extui %0 : i1 to i32
    %c0_i32_0 = arith.constant 0 : i32
    %2 = arith.cmpi ne, %1, %c0_i32_0 : i32
    scf.if %2 {
      %cst_15 = arith.constant 0.000000e+00 : f32
      %18 = vector.broadcast %cst_15 : f32 to vector<8x128xf32>
      %c0_16 = arith.constant 0 : index
      %c0_17 = arith.constant 0 : index
      %19 = vector.load %arg8[%c0_16, %c0_17] : memref<8x128xf32, #tpu.memory_space<vmem>>, vector<8x128xf32>
      tpu.vector_store %arg8[%c0_16, %c0_17], %18 {strides = array<i32>} : memref<8x128xf32, #tpu.memory_space<vmem>>, vector<8x128xf32>,
    } else {
    }
    %c0 = arith.constant 0 : index
    %c0_1 = arith.constant 0 : index
    %3 = vector.load %arg2[%c0, %c0_1] : memref<8x128xf32, #tpu.memory_space<vmem>>, vector<8x128xf32>
    %c0_2 = arith.constant 0 : index
    %c0_3 = arith.constant 0 : index
    %4 = vector.load %arg3[%c0_2, %c0_3] : memref<128x128xf32, #tpu.memory_space<vmem>>, vector<128x128xf32>
    %cst = arith.constant dense<0.000000e+00> : vector<8x128xf32>
    %5 = tpu.matmul %3, %4, %cst {dimension_numbers = #tpu.dot_dimension_numbers<[1], [0], [0], [1], [0, 0, 1, 1], [], []>} : vector<8x128xf32>, vector<128x128xf32>, vector<8x128xf32> -> vector<8x128xf32>
    %c0_4 = arith.constant 0 : index
    %c0_5 = arith.constant 0 : index
    %6 = vector.load %arg4[%c0_4, %c0_5] : memref<1x128xf32, #tpu.memory_space<vmem>>, vector<1x128xf32>
    %7 = vector.broadcast %6 : vector<1x128xf32> to vector<8x128xf32>
    %8 = arith.addf %5, %7 : vector<8x128xf32>
    %9 = math.tanh %8 : vector<8x128xf32>
    %c0_6 = arith.constant 0 : index
    %c0_7 = arith.constant 0 : index
    %10 = vector.load %arg8[%c0_6, %c0_7] : memref<8x128xf32, #tpu.memory_space<vmem>>, vector<8x128xf32>
    %c0_8 = arith.constant 0 : index
    %c0_9 = arith.constant 0 : index
    %11 = vector.load %arg5[%c0_8, %c0_9] : memref<128x128xf32, #tpu.memory_space<vmem>>, vector<128x128xf32>
    %cst_10 = arith.constant dense<0.000000e+00> : vector<8x128xf32>
    %12 = tpu.matmul %9, %11, %cst_10 {dimension_numbers = #tpu.dot_dimension_numbers<[1], [0], [0], [1], [0, 0, 1, 1], [], []>} : vector<8x128xf32>, vector<128x128xf32>, vector<8x128xf32> -> vector<8x128xf32>
    %13 = arith.addf %10, %12 : vector<8x128xf32>
    %c0_11 = arith.constant 0 : index
    %c0_12 = arith.constant 0 : index
    %14 = vector.load %arg8[%c0_11, %c0_12] : memref<8x128xf32, #tpu.memory_space<vmem>>, vector<8x128xf32>
    tpu.vector_store %arg8[%c0_11, %c0_12], %13 {strides = array<i32>} : memref<8x128xf32, #tpu.memory_space<vmem>>, vector<8x128xf32>,
    %c0_i32_13 = arith.constant 0 : i32
    %15 = arith.cmpi eq, %arg1, %c0_i32_13 : i32
    %16 = arith.extui %15 : i1 to i32
    %c0_i32_14 = arith.constant 0 : i32
    %17 = arith.cmpi ne, %16, %c0_i32_14 : i32
    scf.if %17 {
      %c0_15 = arith.constant 0 : index
      %c0_16 = arith.constant 0 : index
      %18 = vector.load %arg8[%c0_15, %c0_16] : memref<8x128xf32, #tpu.memory_space<vmem>>, vector<8x128xf32>
      %c0_17 = arith.constant 0 : index
      %c0_18 = arith.constant 0 : index
      %19 = vector.load %arg6[%c0_17, %c0_18] : memref<1x128xf32, #tpu.memory_space<vmem>>, vector<1x128xf32>
      %20 = vector.broadcast %19 : vector<1x128xf32> to vector<8x128xf32>
      %21 = arith.addf %18, %20 : vector<8x128xf32>
      %c0_19 = arith.constant 0 : index
      %c0_20 = arith.constant 0 : index
      %22 = vector.load %arg7[%c0_19, %c0_20] : memref<8x128xf32, #tpu.memory_space<vmem>>, vector<8x128xf32>
      tpu.vector_store %arg7[%c0_19, %c0_20], %21 {strides = array<i32>} : memref<8x128xf32, #tpu.memory_space<vmem>>, vector<8x128xf32>,
    } else {
    }
    return
  }
  func.func @transform_0(%arg0: i32, %arg1: i32) -> (i32, i32) {
    %c0_i32 = arith.constant 0 : i32
    %c0_i32_0 = arith.constant 0 : i32
    return %arg0, %c0_i32 : i32, i32
  }
  func.func @transform_1(%arg0: i32, %arg1: i32) -> (i32, i32) {
    %c0_i32 = arith.constant 0 : i32
    %c0_i32_0 = arith.constant 0 : i32
    return %c0_i32, %arg1 : i32, i32
  }
  func.func @transform_2(%arg0: i32, %arg1: i32) -> (i32, i32) {
    %c0_i32 = arith.constant 0 : i32
    %c0_i32_0 = arith.constant 0 : i32
    return %c0_i32, %arg1 : i32, i32
  }
  func.func @transform_3(%arg0: i32, %arg1: i32) -> (i32, i32) {
    %c0_i32 = arith.constant 0 : i32
    %c0_i32_0 = arith.constant 0 : i32
    return %arg1, %c0_i32 : i32, i32
  }
  func.func @transform_4(%arg0: i32, %arg1: i32) -> (i32, i32) {
    %c0_i32 = arith.constant 0 : i32
    %c0_i32_0 = arith.constant 0 : i32
    %c0_i32_1 = arith.constant 0 : i32
    return %c0_i32, %c0_i32_0 : i32, i32
  }
  func.func @transform_5(%arg0: i32, %arg1: i32) -> (i32, i32) {
    %c0_i32 = arith.constant 0 : i32
    %c0_i32_0 = arith.constant 0 : i32
    return %arg0, %c0_i32 : i32, i32
  }
}

</mosaic_0001>

<bundles_post_ra>
// kernel: tpu_custom_call.1
= control target key start
LH: loop header
LB: loop body
LE: loop exit
PB: predicated region body
PF: predicated region fallthrough
CT: control target
= control target key end

     0   :  { %10 = vsyncpa [#allocation4], 0  ;;  %s570_s0 = inlined_call_operand.hbm [shape: f32[8,128], index: 0, kind: input, shape index: {}]   ;;  %s571_s1 = inlined_call_operand.hbm [shape: f32[128,128], index: 1, kind: input, shape index: {}]   ;;  %s572_s2 = inlined_call_operand.vmem [shape: f32[1,128], index: 2, kind: input, shape index: {}]   ;;  %s573_s3 = inlined_call_operand.hbm [shape: f32[128,128], index: 3, kind: input, shape index: {}]   ;;  %s574_s4 = inlined_call_operand.vmem [shape: f32[1,128], index: 4, kind: input, shape index: {}]   ;;  %s575_s5 = inlined_call_operand.hbm [shape: f32[8,128], index: 5, kind: output, shape index: {}]  }
   0x1   :  { %11 = vsyncpa [#allocation7], 0 }
   0x2   :  { %12 = vsyncpa [#allocation5], 0  ;;  %s480_s18 = smov [#allocation6]  }
   0x3   :  { %s28_s19 = sshll.u32 %s480_s18, 4  ;;  %s29_s19 = int_to_ptr.vmem [resolvable:$true] %s28_s19 }
   0x4   :  { %s402_s20 = scalar_lea.vmem %s29_s19, 2048  ;;  %p407_p1 = scmp.lt.s32.totalorder %s29_s19, %s29_s19 }
   0x5   :  { %p403_p0 = scmp.ne.s32.totalorder %s29_s19, %s402_s20  ;;  %p408_p2 = scmp.lt.s32.totalorder %s402_s20, %s402_s20 }
   0x7   :  { %p409_p3 = por %p408_p2, %p407_p1 }
   0x9   :  { %p410_p4 = pnand %p409_p3, %p403_p0 }
   0xb   :  { %413 = shalt.err (!%p410_p4)
}
   0xc   :  { %s481_s21 = smov 128   ;;  %s482_s22 = smov 8  }
   0xd   :  { %34 = dma.hbm_to_vmem [thread:$0]  %s571_s1, 2048, %s29_s19, [#allocation7], %s481_s21, %s481_s21, %s482_s22  }
   0xe   :  { %s483_s25 = smov [#allocation3]   ;;  %s484_s27 = smov [#allocation8]  }
   0xf   :  { %s19_s26 = sshll.u32 %s483_s25, 4  ;;  %s42_s28 = sshll.u32 %s484_s27, 4  ;;  %s20_s26 = int_to_ptr.vmem [resolvable:$true] %s19_s26  ;;  %s43_s28 = int_to_ptr.vmem [resolvable:$true] %s42_s28 }
  0x10   :  { %s422_s29 = scalar_lea.vmem %s20_s26, 128  ;;  %p427_p6 = scmp.lt.s32.totalorder %s20_s26, %s20_s26 }
  0x11   :  { %p423_p5 = scmp.ne.s32.totalorder %s20_s26, %s422_s29  ;;  %p428_p7 = scmp.lt.s32.totalorder %s422_s29, %s422_s29 }
  0x13   :  { %p429_p8 = por %p428_p7, %p427_p6 }
  0x15   :  { %p430_p9 = pnand %p429_p8, %p423_p5 }
  0x17   :  { %433 = shalt.err (!%p430_p9)
}
  0x18   :  { %22 = dma.hbm_to_vmem [thread:$0]  %s570_s0, 128, %s20_s26, [#allocation4]  }
  0x19   :  { %s442_s7 = scalar_lea.vmem %s43_s28, 2048  ;;  %p447_p11 = scmp.lt.s32.totalorder %s43_s28, %s43_s28 }
  0x1a   :  { %p443_p10 = scmp.ne.s32.totalorder %s43_s28, %s442_s7  ;;  %p448_p12 = scmp.lt.s32.totalorder %s442_s7, %s442_s7 }
  0x1c   :  { %p449_p13 = por %p448_p12, %p447_p11 }
  0x1e   :  { %p450_p0 = pnand %p449_p13, %p443_p10 }
  0x20   :  { %453 = shalt.err (!%p450_p0)
}
  0x21   :  { %48 = dma.hbm_to_vmem [thread:$0]  %s573_s3, 2048, %s43_s28, [#allocation7], %s481_s21, %s481_s21, %s482_s22  }
  0x22   :  { %474 = dma.done.wait [#allocation4], 128  }
  0x23   :  { %475 = vsyncadd [#allocation4], 4294967168 }
  0x24   :  { %476 = dma.done.wait [#allocation7], 4096  }
  0x25   :  { %477 = vsyncadd [#allocation7], 4294963200  ;;  %v485_v0 = vmov 0.0   ;;  %vm486_vm0 = vmmov 0   ;;  %v81_v1 = vld [vmem:[#allocation6 + $0x78] sm:$0xff]  ;;  %v80_v2 = vld [vmem:[#allocation6 + $0x70] sm:$0xff] }
  0x26   :  { %314 = vmatprep.subr.mxu0 %v485_v0  ;;  %346 = vmatprep.mubr.msk.f32.mxu0 %vm486_vm0, %v485_v0  ;;  %v79_v3 = vld [vmem:[#allocation6 + $0x68] sm:$0xff]  ;;  %v78_v4 = vld [vmem:[#allocation6 + $0x60] sm:$0xff]  ;;  %v176_v5 = vld [vmem:[#allocation8 + $0x78] sm:$0xff]  ;;  %s487_s11 = smov [#allocation9]  }
  0x27   :  { %349 = vmatprep.subr.mxu1 %v485_v0  ;;  %381 = vmatprep.mubr.msk.f32.mxu1 %vm486_vm0, %v485_v0  ;;  %v77_v6 = vld [vmem:[#allocation6 + $0x58] sm:$0xff]  ;;  %v175_v7 = vld [vmem:[#allocation8 + $0x70] sm:$0xff]  ;;  %v174_v8 = vld [vmem:[#allocation8 + $0x68] sm:$0xff]  ;;  %s268_s12 = sshll.u32 %s487_s11, 4  ;;  %s269_s12 = int_to_ptr.vmem [resolvable:$true] %s268_s12 }
  0x28   :  { %315 = vmatpush3.msra.mxu0 %v81_v1  ;;  %350 = vmatpush3.msra.mxu1 %v176_v5  ;;  %v76_v9 = vld [vmem:[#allocation6 + $0x50] sm:$0xff]  ;;  %v173_v10 = vld [vmem:[#allocation8 + $0x60] sm:$0xff]  ;;  %v75_v11 = vld [vmem:[#allocation6 + $0x48] sm:$0xff]  ;;  %s454_s13 = scalar_lea.vmem %s269_s12, 128  ;;  %p459_p2 = scmp.lt.s32.totalorder %s269_s12, %s269_s12 }
  0x29   :  { %316 = vmatprep.subr.mxu0 %v485_v0  ;;  %351 = vmatprep.subr.mxu1 %v485_v0  ;;  %v172_v12 = vld [vmem:[#allocation8 + $0x58] sm:$0xff]  ;;  %v74_v13 = vld [vmem:[#allocation6 + $0x40] sm:$0xff]  ;;  %v171_v14 = vld [vmem:[#allocation8 + $0x50] sm:$0xff]  ;;  %p455_p1 = scmp.ne.s32.totalorder %s269_s12, %s454_s13  ;;  %p460_p3 = scmp.lt.s32.totalorder %s454_s13, %s454_s13 }
  0x2a   :  { %317 = vmatpush3.msra.mxu0 %v80_v2  ;;  %352 = vmatpush3.msra.mxu1 %v175_v7  ;;  %v73_v15 = vld [vmem:[#allocation6 + $0x38] sm:$0xff]  ;;  %v170_v16 = vld [vmem:[#allocation8 + $0x48] sm:$0xff]  ;;  %v72_v17 = vld [vmem:[#allocation6 + $0x30] sm:$0xff] }
  0x2b   :  { %318 = vmatprep.subr.mxu0 %v485_v0  ;;  %353 = vmatprep.subr.mxu1 %v485_v0  ;;  %v71_v18 = vld [vmem:[#allocation6 + $0x28] sm:$0xff]  ;;  %v70_v19 = vld [vmem:[#allocation6 + $0x20] sm:$0xff]  ;;  %v69_v20 = vld [vmem:[#allocation6 + $0x18] sm:$0xff]  ;;  %p461_p4 = por %p460_p3, %p459_p2 }
  0x2c   :  { %319 = vmatpush3.msra.mxu0 %v79_v3  ;;  %354 = vmatpush3.msra.mxu1 %v174_v8  ;;  %v68_v21 = vld [vmem:[#allocation6 + $0x10] sm:$0xff]  ;;  %v67_v22 = vld [vmem:[#allocation6 + $0x8] sm:$0xff]  ;;  %v66_v23 = vld [vmem:[#allocation6] sm:$0xff] }
  0x2d   :  { %320 = vmatprep.subr.mxu0 %v485_v0  ;;  %355 = vmatprep.subr.mxu1 %v485_v0  ;;  %v65_v24 = vld [vmem:[#allocation3] sm:$0xff]  ;;  %v169_v25 = vld [vmem:[#allocation8 + $0x40] sm:$0xff]  ;;  %v167_v27 = vld [vmem:[#allocation8 + $0x30] sm:$0xff]  ;;  %p462_p5 = pnand %p461_p4, %p455_p1 }
  0x2e   :  { %321 = vmatpush3.msra.mxu0 %v78_v4  ;;  %356 = vmatpush3.msra.mxu1 %v173_v10  ;;  %v168_v26 = vld [vmem:[#allocation8 + $0x38] sm:$0xff]  ;;  %v166_v28 = vld [vmem:[#allocation8 + $0x28] sm:$0xff]  ;;  %v165_v29 = vld [vmem:[#allocation8 + $0x20] sm:$0xff] }
  0x2f   :  { %322 = vmatprep.subr.mxu0 %v485_v0  ;;  %357 = vmatprep.subr.mxu1 %v485_v0  ;;  %v164_v30 = vld [vmem:[#allocation8 + $0x18] sm:$0xff]  ;;  %v163_v31 = vld [vmem:[#allocation8 + $0x10] sm:$0xff]  ;;  %v162_v32 = vld [vmem:[#allocation8 + $0x8] sm:$0xff] }
  0x30   :  { %323 = vmatpush3.msra.mxu0 %v77_v6  ;;  %358 = vmatpush3.msra.mxu1 %v172_v12  ;;  %v161_v33 = vld [vmem:[#allocation8] sm:$0xff]  ;;  %v278_v34 = vld [vmem:[%s572_s2] ss:$0 sm:$0xff] }
  0x31   :  { %324 = vmatprep.subr.mxu0 %v485_v0  ;;  %359 = vmatprep.subr.mxu1 %v485_v0  ;;  %v279_v39 = vld [vmem:[%s574_s4] ss:$0 sm:$0xff] }
  0x32   :  { %325 = vmatpush3.msra.mxu0 %v76_v9  ;;  %360 = vmatpush3.msra.mxu1 %v171_v14 }
  0x33   :  { %326 = vmatprep.subr.mxu0 %v485_v0  ;;  %361 = vmatprep.subr.mxu1 %v485_v0 }
  0x34   :  { %327 = vmatpush3.msra.mxu0 %v75_v11  ;;  %362 = vmatpush3.msra.mxu1 %v170_v16 }
  0x35   :  { %328 = vmatprep.subr.mxu0 %v485_v0  ;;  %363 = vmatprep.subr.mxu1 %v485_v0 }
  0x36   :  { %329 = vmatpush3.msra.mxu0 %v74_v13  ;;  %364 = vmatpush3.msra.mxu1 %v169_v25 }
  0x37   :  { %330 = vmatprep.subr.mxu0 %v485_v0  ;;  %365 = vmatprep.subr.mxu1 %v485_v0 }
  0x38   :  { %331 = vmatpush3.msra.mxu0 %v73_v15  ;;  %366 = vmatpush3.msra.mxu1 %v168_v26 }
  0x39   :  { %332 = vmatprep.subr.mxu0 %v485_v0  ;;  %367 = vmatprep.subr.mxu1 %v485_v0 }
  0x3a   :  { %333 = vmatpush3.msra.mxu0 %v72_v17  ;;  %368 = vmatpush3.msra.mxu1 %v167_v27 }
  0x3b   :  { %334 = vmatprep.subr.mxu0 %v485_v0  ;;  %369 = vmatprep.subr.mxu1 %v485_v0 }
  0x3c   :  { %335 = vmatpush3.msra.mxu0 %v71_v18  ;;  %370 = vmatpush3.msra.mxu1 %v166_v28 }
  0x3d   :  { %336 = vmatprep.subr.mxu0 %v485_v0  ;;  %371 = vmatprep.subr.mxu1 %v485_v0 }
  0x3e   :  { %337 = vmatpush3.msra.mxu0 %v70_v19  ;;  %372 = vmatpush3.msra.mxu1 %v165_v29 }
  0x3f   :  { %338 = vmatprep.subr.mxu0 %v485_v0  ;;  %373 = vmatprep.subr.mxu1 %v485_v0 }
  0x40   :  { %339 = vmatpush3.msra.mxu0 %v69_v20  ;;  %374 = vmatpush3.msra.mxu1 %v164_v30 }
  0x41   :  { %340 = vmatprep.subr.mxu0 %v485_v0  ;;  %375 = vmatprep.subr.mxu1 %v485_v0 }
  0x42   :  { %341 = vmatpush3.msra.mxu0 %v68_v21  ;;  %376 = vmatpush3.msra.mxu1 %v163_v31 }
  0x43   :  { %342 = vmatprep.subr.mxu0 %v485_v0  ;;  %377 = vmatprep.subr.mxu1 %v485_v0 }
  0x44   :  { %343 = vmatpush3.msra.mxu0 %v67_v22  ;;  %378 = vmatpush3.msra.mxu1 %v162_v32 }
  0x45   :  { %344 = vmatprep.subr.mxu0 %v485_v0  ;;  %379 = vmatprep.subr.mxu1 %v485_v0 }
  0x46   :  { %345 = vmatpush3.msra.mxu0 %v66_v23  ;;  %380 = vmatpush3.msra.mxu1 %v161_v33 }
  0x47   :  { %347 = vmatmul.mubr.f32.vlgmr.msra.gmra.mxu0 %v65_v24 }
 0x107   :  { %v155_v35 = vpop.f32.mrf.mxu0 }
 0x108   :  { %v156_v36 = vadd.f32 %v278_v34, %v155_v35 }
 0x109   :  { %v348_v37 = vpop.f32.mrf.mxu0 }
 0x10a   :  { %392 = vtanh.f32 %v156_v36 }
 0x117   :  { %v393_v38 = vpop.eup %392 }
 0x118   :  { %382 = vmatmul.mubr.f32.vlgmr.msra.gmra.mxu1 %v393_v38 }
 0x1d8   :  { %v243_v40 = vpop.f32.mrf.mxu1 }
 0x1d9   :  { %v260_v41 = vadd.f32 %v279_v39, %v243_v40 }
 0x1da   :  { %v383_v42 = vpop.f32.mrf.mxu1 }
 0x1db   :  { %261 = vst [vmem:[#allocation9] sm:$0xff] %v260_v41 }
 0x1dc   :  { %465 = shalt.err (!%p462_p5)
}
 0x1dd   :  { %271 = dma.vmem_to_hbm [thread:$0]  %s269_s12, 128, %s575_s5, [#allocation5]  }
 0x1de   :  { %478 = dma.done.wait [#allocation5], 128  }
 0x1df   :  { %479 = vsyncadd [#allocation5], 4294967168 }
 0x1e0   :  { %275 = vsyncpa [#allocation4], 1 }
 0x1e1   :  { %276 = vsyncpa [#allocation7], 1 }
 0x1e2   :  { %277 = vsyncpa [#allocation5], 1 }

</bundles_post_ra>
